<compile_context>
chip_gen: v6e
topology: v6e:2x2x1
jax: 0.10.0
libtpu: 0.0.40
codegen_flags: <defaults>
</compile_context>

<pallas_src>
import functools
import math

import jax
import jax.numpy as jnp
from jax import lax
from jax.experimental import pallas as pl
from jax.experimental.pallas import tpu as pltpu


_INV_SQRT2 = 1.0 / math.sqrt(2.0)
_SQRT_2_OVER_PI = math.sqrt(2.0 / math.pi)


def _gelu(x, approximate):
    if approximate:
        # tanh-based gelu: the transcendental goes to the EUP slot (otherwise
        # idle here), taking the erf polynomial off the VALU, which is the
        # saturating slot on v6e/v7x. Not bit-exact with HF's erf gelu
        # (max deviation ~5e-4 per element).
        inner = _SQRT_2_OVER_PI * (x + 0.044715 * (x * x * x))
        return 0.5 * x * (1.0 + jnp.tanh(inner))
    # exact (erf-based) gelu, matching HF XLNet's ACT2FN["gelu"]
    return 0.5 * x * (1.0 + lax.erf(x * _INV_SQRT2))


def ffn_kernel(x_ref, w1_ref, b1_ref, w2_ref, b2_ref, g_ref, beta_ref,
               o_ref, *, eps, matmul_dtype, approximate_gelu):
    x_in = x_ref[...]                              # single load of the x tile
    x_f32 = x_in.astype(jnp.float32)               # residual copy (f32)

    # layer_1: d_model -> d_inner on the MXU (bf16 in, f32 accumulate).
    h = jnp.dot(x_in.astype(matmul_dtype), w1_ref[...],
                preferred_element_type=jnp.float32)          # (tm, d_inner)
    h = h + b1_ref[...].astype(jnp.float32)
    # gelu with the cast to matmul_dtype fused into the epilogue, so mm2's
    # LHS is produced directly (no extra f32 round trip).
    h = _gelu(h, approximate_gelu).astype(matmul_dtype)
    # TODO(synk): dropout is identity (eval / inference mode); no RNG mask.
    # TODO(synk): if VMEM-tight at very large tm*d_inner, chunk d_inner here
    # (loop: mm1 slice -> gelu -> partial mm2 accumulate into an f32 acc).

    # layer_2: d_inner -> d_model.
    y = jnp.dot(h, w2_ref[...], preferred_element_type=jnp.float32)
    y = y + b2_ref[...].astype(jnp.float32)

    # residual + LayerNorm over the feature dim, all in f32.
    z = y + x_f32
    mean = jnp.mean(z, axis=-1, keepdims=True)
    zc = z - mean
    var = jnp.mean(zc * zc, axis=-1, keepdims=True)
    inv = lax.rsqrt(var + eps)
    out = zc * inv * g_ref[...].astype(jnp.float32) \
        + beta_ref[...].astype(jnp.float32)

    o_ref[...] = out.astype(o_ref.dtype)


def _round_up(x, m):
    return (x + m - 1) // m * m


def _vmem_capacity_bytes():
    """Physical per-core VMEM (128 MiB on v5e/v6e, 64 MiB on v7x)."""
    try:
        info = pltpu.get_tpu_info()
        cap = int(getattr(info, "vmem_capacity_bytes", 0))
        if cap > 0:
            return cap
    except Exception:
        pass
    return 64 << 20  # conservative fallback: v7x per-TensorCore VMEM


def _ffn_call(x_p, w1_c, b1_2d, w2_c, b2_2d, g_2d, be_2d, *, tm_eff, eps,
              matmul_dtype, approximate_gelu, weight_buffers, vmem_limit):
    m_pad, d_model = x_p.shape
    d_inner = w1_c.shape[1]
    grid = (m_pad // tm_eff,)

    def _const_spec(shape):
        # Grid-invariant operand: constant index_map -> DMA'd once. With
        # Buffered(1) only one VMEM copy is allocated instead of two.
        if weight_buffers:
            return pl.BlockSpec(shape, lambda i: (0, 0),
                                pipeline_mode=pl.Buffered(weight_buffers))
        return pl.BlockSpec(shape, lambda i: (0, 0))

    kernel = functools.partial(ffn_kernel, eps=eps, matmul_dtype=matmul_dtype,
                               approximate_gelu=approximate_gelu)

    return pl.pallas_call(
        kernel,
        out_shape=jax.ShapeDtypeStruct((m_pad, d_model), x_p.dtype),
        grid_spec=pltpu.PrefetchScalarGridSpec(
            num_scalar_prefetch=0,
            grid=grid,
            in_specs=[
                pl.BlockSpec((tm_eff, d_model), lambda i: (i, 0)),   # x tile
                _const_spec((d_model, d_inner)),                     # W1
                _const_spec((1, d_inner)),                           # b1
                _const_spec((d_inner, d_model)),                     # W2
                _const_spec((1, d_model)),                           # b2
                _const_spec((1, d_model)),                           # gamma
                _const_spec((1, d_model)),                           # beta
            ],
            out_specs=pl.BlockSpec((tm_eff, d_model), lambda i: (i, 0)),
        ),
        compiler_params=pltpu.CompilerParams(
            # M tiles are independent -> shards across v7x's 2 TensorCores.
            dimension_semantics=("parallel",),
            vmem_limit_bytes=vmem_limit,
        ),
    )(x_p, w1_c, b1_2d, w2_c, b2_2d, g_2d, be_2d)


def xlnet_feedforward(x, w1, b1, w2, b2, gamma, beta, *, eps=1e-12, tm=None,
                      matmul_dtype=jnp.bfloat16, approximate_gelu=True,
                      single_buffer_weights=True):
    """Fused XLNet FFN. x: (M, d_model) -> (M, d_model).

    tm: rows per grid step. None -> auto: 512 on 128-MiB-VMEM parts
    (v5e/v6e), 256 on 64-MiB parts (v7x); sweep 256-1024 for your shapes.
    Rows are zero-padded to a multiple of the tile and sliced off the output,
    and the tile is clamped so short sequences still yield >=2 grid steps
    (v7x megacore). approximate_gelu=True is the perf default (tanh on the
    EUP); pass False for bit-parity with HF's erf gelu. matmul_dtype=float32
    gives the full-precision path.
    """
    M, d_model = x.shape
    d_inner = w1.shape[1]
    assert w1.shape == (d_model, d_inner)
    assert w2.shape == (d_inner, d_model)
    assert b1.shape == (d_inner,) and b2.shape == (d_model,)
    assert gamma.shape == (d_model,) and beta.shape == (d_model,)

    vmem_cap = _vmem_capacity_bytes()
    if tm is None:
        tm = 512 if vmem_cap >= (96 << 20) else 256

    # Row alignment: 8 sublanes for 32-bit inputs, 16 for 16-bit packing.
    row_align = 8 if jnp.dtype(x.dtype).itemsize >= 4 else 16
    m_ceil = _round_up(M, row_align)
    tm_eff = max(row_align, min(_round_up(tm, row_align), m_ceil))
    # Keep >=2 grid steps when M allows, so both v7x TensorCores get work on
    # short sequences (on single-TC v5e/v6e this costs one ~0.35us step).
    if M > row_align and -(-m_ceil // tm_eff) < 2:
        tm_eff = _round_up(-(-M // 2), row_align)
    m_pad = _round_up(M, tm_eff)
    x_p = x if m_pad == M else jnp.pad(x, ((0, m_pad - M), (0, 0)))

    # bf16 weights: halves weight DMA + resident VMEM; MXU accumulates f32.
    w1_c = w1.astype(matmul_dtype)
    w2_c = w2.astype(matmul_dtype)
    # Small params stay f32, shaped (1, D) so they sit cleanly in VMEM lanes.
    b1_2d = b1.reshape(1, d_inner).astype(jnp.float32)
    b2_2d = b2.reshape(1, d_model).astype(jnp.float32)
    g_2d = gamma.reshape(1, d_model).astype(jnp.float32)
    be_2d = beta.reshape(1, d_model).astype(jnp.float32)

    # VMEM budget: x/out tiles (double-buffered), weights (conservatively
    # sized for 2 buffers so the fallback path also fits), small params and
    # element-wise temporaries; capped below the physical per-core VMEM.
    itm = jnp.dtype(matmul_dtype).itemsize
    ixd = jnp.dtype(x.dtype).itemsize
    need = (
        2 * tm_eff * d_model * ixd            # x tiles (double-buffered)
        + 2 * tm_eff * d_model * ixd          # out tiles (double-buffered)
        + 2 * 2 * d_model * d_inner * itm     # W1 + W2 (worst case, 2 bufs)
        + 2 * (d_inner + 3 * d_model) * 4     # b1, b2, gamma, beta
        + tm_eff * d_inner * (4 + itm)        # h (f32) + matmul_dtype copy
        + 4 * tm_eff * d_model * 4            # f32 temporaries (y, z, out, ..)
    )
    vmem_limit = int(min(int(vmem_cap * 0.85),
                         max(need + (8 << 20), 32 << 20)))

    args = (x_p, w1_c, b1_2d, w2_c, b2_2d, g_2d, be_2d)
    call_kwargs = dict(tm_eff=tm_eff, eps=eps, matmul_dtype=matmul_dtype,
                       approximate_gelu=approximate_gelu,
                       vmem_limit=vmem_limit)

    if single_buffer_weights:
        try:
            out = _ffn_call(*args, weight_buffers=1, **call_kwargs)
            # Block so any Buffered(1) lowering issue surfaces here and we
            # can fall back (no-op under tracing).
            out = jax.block_until_ready(out)
        except Exception:
            out = _ffn_call(*args, weight_buffers=None, **call_kwargs)
    else:
        out = _ffn_call(*args, weight_buffers=None, **call_kwargs)

    return out[:M] if m_pad != M else out


def _reference(x, w1, b1, w2, b2, gamma, beta, eps, matmul_dtype=None,
               approximate_gelu=False):
    """Pure-JAX reference. If matmul_dtype is set, mimic the kernel's
    mixed-precision matmuls (cast inputs, accumulate in f32)."""
    def mm(a, b):
        if matmul_dtype is not None:
            a = a.astype(matmul_dtype)
            b = b.astype(matmul_dtype)
        return jnp.dot(a, b, preferred_element_type=jnp.float32)

    xf = x.astype(jnp.float32)
    h = mm(x, w1) + b1
    h = _gelu(h, approximate_gelu)
    y = mm(h, w2) + b2
    z = y + xf
    mu = z.mean(-1, keepdims=True)
    var = ((z - mu) ** 2).mean(-1, keepdims=True)
    return (z - mu) * lax.rsqrt(var + eps) * gamma + beta


if __name__ == "__main__":
    # Small but lane-dense config: d_model=128, d_inner=256, seq=8, batch=2.
    d_model, d_inner = 128, 256
    seq_len, batch = 8, 2
    M = seq_len * batch
    eps = 1e-12

    key = jax.random.PRNGKey(0)
    kx, k1, k2 = jax.random.split(key, 3)

    x = jax.random.normal(kx, (seq_len, batch, d_model), jnp.float32)
    scale = math.sqrt(2.0 / (d_model + d_inner))
    w1 = jax.random.normal(k1, (d_model, d_inner), jnp.float32) * scale
    b1 = jnp.zeros((d_inner,), jnp.float32)
    w2 = jax.random.normal(k2, (d_inner, d_model), jnp.float32) * scale
    b2 = jnp.zeros((d_model,), jnp.float32)
    gamma = jnp.ones((d_model,), jnp.float32)
    beta = jnp.zeros((d_model,), jnp.float32)

    x2d = x.reshape(M, d_model)

    # 1) Perf-default path: bf16 MXU matmuls + tanh (EUP) gelu.
    out_fast = xlnet_feedforward(x2d, w1, b1, w2, b2, gamma, beta, eps=eps)
    out_fast = jax.block_until_ready(out_fast)
    assert out_fast.reshape(seq_len, batch, d_model).shape == \
        (seq_len, batch, d_model)
    ref_fast = _reference(x2d, w1, b1, w2, b2, gamma, beta, eps,
                          matmul_dtype=jnp.bfloat16, approximate_gelu=True)
    assert jnp.allclose(out_fast, ref_fast, atol=2e-3, rtol=2e-3), \
        "mismatch vs mixed-precision (tanh gelu) reference"

    # 2) HF-parity path: exact erf gelu (still bf16 MXU matmuls).
    out_exact = xlnet_feedforward(x2d, w1, b1, w2, b2, gamma, beta, eps=eps,
                                  approximate_gelu=False)
    out_exact = jax.block_until_ready(out_exact)
    ref_exact = _reference(x2d, w1, b1, w2, b2, gamma, beta, eps,
                           matmul_dtype=jnp.bfloat16, approximate_gelu=False)
    assert jnp.allclose(out_exact, ref_exact, atol=2e-3, rtol=2e-3), \
        "mismatch vs mixed-precision (erf gelu) reference"

    # Loose semantic sanity checks vs. the full-f32 erf reference.
    ref_f32 = _reference(x2d, w1, b1, w2, b2, gamma, beta, eps)
    assert jnp.allclose(out_fast, ref_f32, atol=1e-1, rtol=0.0), \
        "perf path deviates from f32 reference"
    assert jnp.allclose(out_exact, ref_f32, atol=1e-1, rtol=0.0), \
        "parity path deviates from f32 reference"

    print("KERNEL_OK")
</pallas_src>

<mosaic_0001>
module attributes {stable_mosaic.version = 11 : i64} {
  func.func @ffn_kernel(%arg0: i32, %arg1: memref<8x128xf32, #tpu.memory_space<vmem>>, %arg2: memref<128x256xbf16, #tpu.memory_space<vmem>>, %arg3: memref<1x256xf32, #tpu.memory_space<vmem>>, %arg4: memref<256x128xbf16, #tpu.memory_space<vmem>>, %arg5: memref<1x128xf32, #tpu.memory_space<vmem>>, %arg6: memref<1x128xf32, #tpu.memory_space<vmem>>, %arg7: memref<1x128xf32, #tpu.memory_space<vmem>>, %arg8: memref<8x128xf32, #tpu.memory_space<vmem>>) attributes {dimension_semantics = [#tpu.dimension_semantics<parallel>], iteration_bounds = array<i64: 2>, scalar_prefetch = 0 : i64, scratch_operands = 0 : i64, tpu.core_type = #tpu.core_type<tc>, window_params = [{transform_indices = @transform_0, window_bounds = array<i64: 8, 128>}, {pipeline_mode = #tpu.pipeline_mode<synchronous>, transform_indices = @transform_1, window_bounds = array<i64: 128, 256>}, {pipeline_mode = #tpu.pipeline_mode<synchronous>, transform_indices = @transform_2, window_bounds = array<i64: 1, 256>}, {pipeline_mode = #tpu.pipeline_mode<synchronous>, transform_indices = @transform_3, window_bounds = array<i64: 256, 128>}, {pipeline_mode = #tpu.pipeline_mode<synchronous>, transform_indices = @transform_4, window_bounds = array<i64: 1, 128>}, {pipeline_mode = #tpu.pipeline_mode<synchronous>, transform_indices = @transform_5, window_bounds = array<i64: 1, 128>}, {pipeline_mode = #tpu.pipeline_mode<synchronous>, transform_indices = @transform_6, window_bounds = array<i64: 1, 128>}, {transform_indices = @transform_7, window_bounds = array<i64: 8, 128>}]} {
    %c0 = arith.constant 0 : index
    %c0_0 = arith.constant 0 : index
    %0 = vector.load %arg1[%c0, %c0_0] : memref<8x128xf32, #tpu.memory_space<vmem>>, vector<8x128xf32>
    %1 = arith.truncf %0 : vector<8x128xf32> to vector<8x128xbf16>
    %c0_1 = arith.constant 0 : index
    %c0_2 = arith.constant 0 : index
    %2 = vector.load %arg2[%c0_1, %c0_2] : memref<128x256xbf16, #tpu.memory_space<vmem>>, vector<128x256xbf16>
    %cst = arith.constant dense<0.000000e+00> : vector<8x256xf32>
    %3 = tpu.matmul %1, %2, %cst {dimension_numbers = #tpu.dot_dimension_numbers<[1], [0], [0], [1], [0, 0, 1, 1], [], []>} : vector<8x128xbf16>, vector<128x256xbf16>, vector<8x256xf32> -> vector<8x256xf32>
    %c0_3 = arith.constant 0 : index
    %c0_4 = arith.constant 0 : index
    %4 = vector.load %arg3[%c0_3, %c0_4] : memref<1x256xf32, #tpu.memory_space<vmem>>, vector<1x256xf32>
    %5 = vector.broadcast %4 : vector<1x256xf32> to vector<8x256xf32>
    %6 = arith.addf %3, %5 : vector<8x256xf32>
    %7 = arith.mulf %6, %6 : vector<8x256xf32>
    %8 = arith.mulf %7, %6 : vector<8x256xf32>
    %cst_5 = arith.constant 4.471500e-02 : f32
    %9 = vector.broadcast %cst_5 : f32 to vector<8x256xf32>
    %10 = arith.mulf %9, %8 : vector<8x256xf32>
    %11 = arith.addf %6, %10 : vector<8x256xf32>
    %cst_6 = arith.constant 0.797884583 : f32
    %12 = vector.broadcast %cst_6 : f32 to vector<8x256xf32>
    %13 = arith.mulf %12, %11 : vector<8x256xf32>
    %cst_7 = arith.constant 5.000000e-01 : f32
    %14 = vector.broadcast %cst_7 : f32 to vector<8x256xf32>
    %15 = arith.mulf %14, %6 : vector<8x256xf32>
    %16 = math.tanh %13 : vector<8x256xf32>
    %cst_8 = arith.constant 1.000000e+00 : f32
    %17 = vector.broadcast %cst_8 : f32 to vector<8x256xf32>
    %18 = arith.addf %17, %16 : vector<8x256xf32>
    %19 = arith.mulf %15, %18 : vector<8x256xf32>
    %20 = arith.truncf %19 : vector<8x256xf32> to vector<8x256xbf16>
    %c0_9 = arith.constant 0 : index
    %c0_10 = arith.constant 0 : index
    %21 = vector.load %arg4[%c0_9, %c0_10] : memref<256x128xbf16, #tpu.memory_space<vmem>>, vector<256x128xbf16>
    %cst_11 = arith.constant dense<0.000000e+00> : vector<8x128xf32>
    %22 = tpu.matmul %20, %21, %cst_11 {dimension_numbers = #tpu.dot_dimension_numbers<[1], [0], [0], [1], [0, 0, 1, 1], [], []>} : vector<8x256xbf16>, vector<256x128xbf16>, vector<8x128xf32> -> vector<8x128xf32>
    %c0_12 = arith.constant 0 : index
    %c0_13 = arith.constant 0 : index
    %23 = vector.load %arg5[%c0_12, %c0_13] : memref<1x128xf32, #tpu.memory_space<vmem>>, vector<1x128xf32>
    %24 = vector.broadcast %23 : vector<1x128xf32> to vector<8x128xf32>
    %25 = arith.addf %22, %24 : vector<8x128xf32>
    %26 = arith.addf %25, %0 : vector<8x128xf32>
    %cst_14 = arith.constant dense<0.000000e+00> : vector<8xf32>
    %27 = vector.multi_reduction <add>, %26, %cst_14 [1] : vector<8x128xf32> to vector<8xf32>
    %28 = vector.shape_cast %27 : vector<8xf32> to vector<8x1xf32>
    %cst_15 = arith.constant 1.280000e+02 : f32
    %29 = vector.broadcast %cst_15 : f32 to vector<8x1xf32>
    %30 = arith.divf %28, %29 : vector<8x1xf32>
    %31 = vector.broadcast %30 : vector<8x1xf32> to vector<8x128xf32>
    %32 = arith.subf %26, %31 : vector<8x128xf32>
    %33 = arith.mulf %32, %32 : vector<8x128xf32>
    %cst_16 = arith.constant dense<0.000000e+00> : vector<8xf32>
    %34 = vector.multi_reduction <add>, %33, %cst_16 [1] : vector<8x128xf32> to vector<8xf32>
    %35 = vector.shape_cast %34 : vector<8xf32> to vector<8x1xf32>
    %cst_17 = arith.constant 1.280000e+02 : f32
    %36 = vector.broadcast %cst_17 : f32 to vector<8x1xf32>
    %37 = arith.divf %35, %36 : vector<8x1xf32>
    %cst_18 = arith.constant 9.99999996E-13 : f32
    %38 = vector.broadcast %cst_18 : f32 to vector<8x1xf32>
    %39 = arith.addf %37, %38 : vector<8x1xf32>
    %40 = math.rsqrt %39 : vector<8x1xf32>
    %41 = vector.broadcast %40 : vector<8x1xf32> to vector<8x128xf32>
    %42 = arith.mulf %32, %41 : vector<8x128xf32>
    %c0_19 = arith.constant 0 : index
    %c0_20 = arith.constant 0 : index
    %43 = vector.load %arg6[%c0_19, %c0_20] : memref<1x128xf32, #tpu.memory_space<vmem>>, vector<1x128xf32>
    %44 = vector.broadcast %43 : vector<1x128xf32> to vector<8x128xf32>
    %45 = arith.mulf %42, %44 : vector<8x128xf32>
    %c0_21 = arith.constant 0 : index
    %c0_22 = arith.constant 0 : index
    %46 = vector.load %arg7[%c0_21, %c0_22] : memref<1x128xf32, #tpu.memory_space<vmem>>, vector<1x128xf32>
    %47 = vector.broadcast %46 : vector<1x128xf32> to vector<8x128xf32>
    %48 = arith.addf %45, %47 : vector<8x128xf32>
    %c0_23 = arith.constant 0 : index
    %c0_24 = arith.constant 0 : index
    %49 = vector.load %arg8[%c0_23, %c0_24] : memref<8x128xf32, #tpu.memory_space<vmem>>, vector<8x128xf32>
    tpu.vector_store %arg8[%c0_23, %c0_24], %48 {strides = array<i32>} : memref<8x128xf32, #tpu.memory_space<vmem>>, vector<8x128xf32>,
    return
  }
  func.func @transform_0(%arg0: i32) -> (i32, i32) {
    %c0_i32 = arith.constant 0 : i32
    %c0_i32_0 = arith.constant 0 : i32
    return %arg0, %c0_i32 : i32, i32
  }
  func.func @transform_1(%arg0: i32) -> (i32, i32) {
    %c0_i32 = arith.constant 0 : i32
    %c0_i32_0 = arith.constant 0 : i32
    %c0_i32_1 = arith.constant 0 : i32
    return %c0_i32, %c0_i32_0 : i32, i32
  }
  func.func @transform_2(%arg0: i32) -> (i32, i32) {
    %c0_i32 = arith.constant 0 : i32
    %c0_i32_0 = arith.constant 0 : i32
    %c0_i32_1 = arith.constant 0 : i32
    return %c0_i32, %c0_i32_0 : i32, i32
  }
  func.func @transform_3(%arg0: i32) -> (i32, i32) {
    %c0_i32 = arith.constant 0 : i32
    %c0_i32_0 = arith.constant 0 : i32
    %c0_i32_1 = arith.constant 0 : i32
    return %c0_i32, %c0_i32_0 : i32, i32
  }
  func.func @transform_4(%arg0: i32) -> (i32, i32) {
    %c0_i32 = arith.constant 0 : i32
    %c0_i32_0 = arith.constant 0 : i32
    %c0_i32_1 = arith.constant 0 : i32
    return %c0_i32, %c0_i32_0 : i32, i32
  }
  func.func @transform_5(%arg0: i32) -> (i32, i32) {
    %c0_i32 = arith.constant 0 : i32
    %c0_i32_0 = arith.constant 0 : i32
    %c0_i32_1 = arith.constant 0 : i32
    return %c0_i32, %c0_i32_0 : i32, i32
  }
  func.func @transform_6(%arg0: i32) -> (i32, i32) {
    %c0_i32 = arith.constant 0 : i32
    %c0_i32_0 = arith.constant 0 : i32
    %c0_i32_1 = arith.constant 0 : i32
    return %c0_i32, %c0_i32_0 : i32, i32
  }
  func.func @transform_7(%arg0: i32) -> (i32, i32) {
    %c0_i32 = arith.constant 0 : i32
    %c0_i32_0 = arith.constant 0 : i32
    return %arg0, %c0_i32 : i32, i32
  }
}

module attributes {stable_mosaic.version = 11 : i64} {
  func.func @ffn_kernel(%arg0: i32, %arg1: memref<8x128xf32, #tpu.memory_space<vmem>>, %arg2: memref<128x256xbf16, #tpu.memory_space<vmem>>, %arg3: memref<1x256xf32, #tpu.memory_space<vmem>>, %arg4: memref<256x128xbf16, #tpu.memory_space<vmem>>, %arg5: memref<1x128xf32, #tpu.memory_space<vmem>>, %arg6: memref<1x128xf32, #tpu.memory_space<vmem>>, %arg7: memref<1x128xf32, #tpu.memory_space<vmem>>, %arg8: memref<8x128xf32, #tpu.memory_space<vmem>>) attributes {dimension_semantics = [#tpu.dimension_semantics<parallel>], iteration_bounds = array<i64: 2>, scalar_prefetch = 0 : i64, scratch_operands = 0 : i64, tpu.core_type = #tpu.core_type<tc>, window_params = [{transform_indices = @transform_0, window_bounds = array<i64: 8, 128>}, {pipeline_mode = #tpu.pipeline_mode<synchronous>, transform_indices = @transform_1, window_bounds = array<i64: 128, 256>}, {pipeline_mode = #tpu.pipeline_mode<synchronous>, transform_indices = @transform_2, window_bounds = array<i64: 1, 256>}, {pipeline_mode = #tpu.pipeline_mode<synchronous>, transform_indices = @transform_3, window_bounds = array<i64: 256, 128>}, {pipeline_mode = #tpu.pipeline_mode<synchronous>, transform_indices = @transform_4, window_bounds = array<i64: 1, 128>}, {pipeline_mode = #tpu.pipeline_mode<synchronous>, transform_indices = @transform_5, window_bounds = array<i64: 1, 128>}, {pipeline_mode = #tpu.pipeline_mode<synchronous>, transform_indices = @transform_6, window_bounds = array<i64: 1, 128>}, {transform_indices = @transform_7, window_bounds = array<i64: 8, 128>}]} {
    %c0 = arith.constant 0 : index
    %c0_0 = arith.constant 0 : index
    %0 = vector.load %arg1[%c0, %c0_0] : memref<8x128xf32, #tpu.memory_space<vmem>>, vector<8x128xf32>
    %1 = arith.truncf %0 : vector<8x128xf32> to vector<8x128xbf16>
    %c0_1 = arith.constant 0 : index
    %c0_2 = arith.constant 0 : index
    %2 = vector.load %arg2[%c0_1, %c0_2] : memref<128x256xbf16, #tpu.memory_space<vmem>>, vector<128x256xbf16>
    %cst = arith.constant dense<0.000000e+00> : vector<8x256xf32>
    %3 = tpu.matmul %1, %2, %cst {dimension_numbers = #tpu.dot_dimension_numbers<[1], [0], [0], [1], [0, 0, 1, 1], [], []>} : vector<8x128xbf16>, vector<128x256xbf16>, vector<8x256xf32> -> vector<8x256xf32>
    %c0_3 = arith.constant 0 : index
    %c0_4 = arith.constant 0 : index
    %4 = vector.load %arg3[%c0_3, %c0_4] : memref<1x256xf32, #tpu.memory_space<vmem>>, vector<1x256xf32>
    %5 = vector.broadcast %4 : vector<1x256xf32> to vector<8x256xf32>
    %6 = arith.addf %3, %5 : vector<8x256xf32>
    %7 = arith.mulf %6, %6 : vector<8x256xf32>
    %8 = arith.mulf %7, %6 : vector<8x256xf32>
    %cst_5 = arith.constant 4.471500e-02 : f32
    %9 = vector.broadcast %cst_5 : f32 to vector<8x256xf32>
    %10 = arith.mulf %9, %8 : vector<8x256xf32>
    %11 = arith.addf %6, %10 : vector<8x256xf32>
    %cst_6 = arith.constant 0.797884583 : f32
    %12 = vector.broadcast %cst_6 : f32 to vector<8x256xf32>
    %13 = arith.mulf %12, %11 : vector<8x256xf32>
    %cst_7 = arith.constant 5.000000e-01 : f32
    %14 = vector.broadcast %cst_7 : f32 to vector<8x256xf32>
    %15 = arith.mulf %14, %6 : vector<8x256xf32>
    %16 = math.tanh %13 : vector<8x256xf32>
    %cst_8 = arith.constant 1.000000e+00 : f32
    %17 = vector.broadcast %cst_8 : f32 to vector<8x256xf32>
    %18 = arith.addf %17, %16 : vector<8x256xf32>
    %19 = arith.mulf %15, %18 : vector<8x256xf32>
    %20 = arith.truncf %19 : vector<8x256xf32> to vector<8x256xbf16>
    %c0_9 = arith.constant 0 : index
    %c0_10 = arith.constant 0 : index
    %21 = vector.load %arg4[%c0_9, %c0_10] : memref<256x128xbf16, #tpu.memory_space<vmem>>, vector<256x128xbf16>
    %cst_11 = arith.constant dense<0.000000e+00> : vector<8x128xf32>
    %22 = tpu.matmul %20, %21, %cst_11 {dimension_numbers = #tpu.dot_dimension_numbers<[1], [0], [0], [1], [0, 0, 1, 1], [], []>} : vector<8x256xbf16>, vector<256x128xbf16>, vector<8x128xf32> -> vector<8x128xf32>
    %c0_12 = arith.constant 0 : index
    %c0_13 = arith.constant 0 : index
    %23 = vector.load %arg5[%c0_12, %c0_13] : memref<1x128xf32, #tpu.memory_space<vmem>>, vector<1x128xf32>
    %24 = vector.broadcast %23 : vector<1x128xf32> to vector<8x128xf32>
    %25 = arith.addf %22, %24 : vector<8x128xf32>
    %26 = arith.addf %25, %0 : vector<8x128xf32>
    %cst_14 = arith.constant dense<0.000000e+00> : vector<8xf32>
    %27 = vector.multi_reduction <add>, %26, %cst_14 [1] : vector<8x128xf32> to vector<8xf32>
    %28 = vector.shape_cast %27 : vector<8xf32> to vector<8x1xf32>
    %cst_15 = arith.constant 1.280000e+02 : f32
    %29 = vector.broadcast %cst_15 : f32 to vector<8x1xf32>
    %30 = arith.divf %28, %29 : vector<8x1xf32>
    %31 = vector.broadcast %30 : vector<8x1xf32> to vector<8x128xf32>
    %32 = arith.subf %26, %31 : vector<8x128xf32>
    %33 = arith.mulf %32, %32 : vector<8x128xf32>
    %cst_16 = arith.constant dense<0.000000e+00> : vector<8xf32>
    %34 = vector.multi_reduction <add>, %33, %cst_16 [1] : vector<8x128xf32> to vector<8xf32>
    %35 = vector.shape_cast %34 : vector<8xf32> to vector<8x1xf32>
    %cst_17 = arith.constant 1.280000e+02 : f32
    %36 = vector.broadcast %cst_17 : f32 to vector<8x1xf32>
    %37 = arith.divf %35, %36 : vector<8x1xf32>
    %cst_18 = arith.constant 9.99999996E-13 : f32
    %38 = vector.broadcast %cst_18 : f32 to vector<8x1xf32>
    %39 = arith.addf %37, %38 : vector<8x1xf32>
    %40 = math.rsqrt %39 : vector<8x1xf32>
    %41 = vector.broadcast %40 : vector<8x1xf32> to vector<8x128xf32>
    %42 = arith.mulf %32, %41 : vector<8x128xf32>
    %c0_19 = arith.constant 0 : index
    %c0_20 = arith.constant 0 : index
    %43 = vector.load %arg6[%c0_19, %c0_20] : memref<1x128xf32, #tpu.memory_space<vmem>>, vector<1x128xf32>
    %44 = vector.broadcast %43 : vector<1x128xf32> to vector<8x128xf32>
    %45 = arith.mulf %42, %44 : vector<8x128xf32>
    %c0_21 = arith.constant 0 : index
    %c0_22 = arith.constant 0 : index
    %46 = vector.load %arg7[%c0_21, %c0_22] : memref<1x128xf32, #tpu.memory_space<vmem>>, vector<1x128xf32>
    %47 = vector.broadcast %46 : vector<1x128xf32> to vector<8x128xf32>
    %48 = arith.addf %45, %47 : vector<8x128xf32>
    %c0_23 = arith.constant 0 : index
    %c0_24 = arith.constant 0 : index
    %49 = vector.load %arg8[%c0_23, %c0_24] : memref<8x128xf32, #tpu.memory_space<vmem>>, vector<8x128xf32>
    tpu.vector_store %arg8[%c0_23, %c0_24], %48 {strides = array<i32>} : memref<8x128xf32, #tpu.memory_space<vmem>>, vector<8x128xf32>,
    return
  }
  func.func @transform_0(%arg0: i32) -> (i32, i32) {
    %c0_i32 = arith.constant 0 : i32
    %c0_i32_0 = arith.constant 0 : i32
    return %arg0, %c0_i32 : i32, i32
  }
  func.func @transform_1(%arg0: i32) -> (i32, i32) {
    %c0_i32 = arith.constant 0 : i32
    %c0_i32_0 = arith.constant 0 : i32
    %c0_i32_1 = arith.constant 0 : i32
    return %c0_i32, %c0_i32_0 : i32, i32
  }
  func.func @transform_2(%arg0: i32) -> (i32, i32) {
    %c0_i32 = arith.constant 0 : i32
    %c0_i32_0 = arith.constant 0 : i32
    %c0_i32_1 = arith.constant 0 : i32
    return %c0_i32, %c0_i32_0 : i32, i32
  }
  func.func @transform_3(%arg0: i32) -> (i32, i32) {
    %c0_i32 = arith.constant 0 : i32
    %c0_i32_0 = arith.constant 0 : i32
    %c0_i32_1 = arith.constant 0 : i32
    return %c0_i32, %c0_i32_0 : i32, i32
  }
  func.func @transform_4(%arg0: i32) -> (i32, i32) {
    %c0_i32 = arith.constant 0 : i32
    %c0_i32_0 = arith.constant 0 : i32
    %c0_i32_1 = arith.constant 0 : i32
    return %c0_i32, %c0_i32_0 : i32, i32
  }
  func.func @transform_5(%arg0: i32) -> (i32, i32) {
    %c0_i32 = arith.constant 0 : i32
    %c0_i32_0 = arith.constant 0 : i32
    %c0_i32_1 = arith.constant 0 : i32
    return %c0_i32, %c0_i32_0 : i32, i32
  }
  func.func @transform_6(%arg0: i32) -> (i32, i32) {
    %c0_i32 = arith.constant 0 : i32
    %c0_i32_0 = arith.constant 0 : i32
    %c0_i32_1 = arith.constant 0 : i32
    return %c0_i32, %c0_i32_0 : i32, i32
  }
  func.func @transform_7(%arg0: i32) -> (i32, i32) {
    %c0_i32 = arith.constant 0 : i32
    %c0_i32_0 = arith.constant 0 : i32
    return %arg0, %c0_i32 : i32, i32
  }
}

</mosaic_0001>

<bundles_post_ra>
// kernel: tpu_custom_call.1
= control target key start
LH: loop header
LB: loop body
LE: loop exit
PB: predicated region body
PF: predicated region fallthrough
CT: control target
= control target key end

     0   :  { %s1382_s0 = inlined_call_operand.hbm [shape: f32[16,128], index: 0, kind: input, shape index: {}]   ;;  %s1383_s1 = inlined_call_operand.hbm [shape: bf16[128,256], index: 1, kind: input, shape index: {}]   ;;  %s1384_s2 = inlined_call_operand.vmem [shape: f32[1,256], index: 2, kind: input, shape index: {}]   ;;  %s1385_s3 = inlined_call_operand.hbm [shape: bf16[256,128], index: 3, kind: input, shape index: {}]   ;;  %s1386_s4 = inlined_call_operand.vmem [shape: f32[1,128], index: 4, kind: input, shape index: {}]   ;;  %s1387_s5 = inlined_call_operand.vmem [shape: f32[1,128], index: 5, kind: input, shape index: {}]   ;;  %s1388_s6 = inlined_call_operand.vmem [shape: f32[1,128], index: 6, kind: input, shape index: {}]   ;;  %s1389_s7 = inlined_call_operand.hbm [shape: f32[16,128], index: 7, kind: output, shape index: {}]  }
   0x1   :  { %1394 = sst [smem:[#allocation12_spill]] %s1383_s1 }
   0x2   :  { %1395 = sst [smem:[#allocation13_spill]] %s1385_s3 }
   0x3   :  { %12 = vsyncpa [#allocation3], 0 }
   0x4   :  { %14 = vsyncpa [#allocation3 + $0x1], 0 }
   0x5   :  { %15 = vsyncpa [#allocation6], 0 }
   0x6   :  { %16 = vsyncpa [#allocation4], 0 }
   0x7   :  { %18 = vsyncpa [#allocation4 + $0x1], 0  ;;  %s1193_s24 = smov 0   ;;  %s1195_s25 = smov 0  }
   0x8   :  { %s1197_s26 = smov 0   ;;  %s1199_s27 = smov 0  }
   0x9 LB: > { %s1214_s28 = sadd.s32 4294967295, %s1142_s27   ;;  %s803_s29 = sadd.s32 4294967294, %s1142_s27   ;;  %s1142_s27 = sphi %s1199_s27, %s1415_s27   ;;  %s1138_s26 = sphi %s1197_s26, %s1414_s26   ;;  %s1134_s25 = sphi %s1195_s25, %s1413_s25   ;;  %s1130_s24 = sphi %s1193_s24, %s1412_s24  }
   0xa   : > { %p44_p0 = scmp.ne.s32.totalorder %s1134_s25, %s1130_s24  ;;  %p1390_p1 = scmp.eq.s32.totalorder %s1214_s28, 0 }
   0xb   : > { %p200_p3 = scmp.eq.s32.totalorder %s803_s29, 1  ;;  %p804_p5 = scmp.ge.s32.totalorder %s1142_s27, 1 }
   0xc   : > { %p1223_p4 = por %p1390_p1, %p44_p0  ;;  %p207_p7 = scmp.lt.s32.totalorder %s1142_s27, 3 }
   0xd   : > { %p1228_p6 = por %p200_p3, %p44_p0  ;;  %s1144_s10 = smov [#allocation5]  }
   0xe   : > { %s1396_s30 = scalar_select %p1223_p4, 1, 0 }
   0xf   : > { %s1397_s8 = scalar_select %p1228_p6, 1, 0 }
  0x10   : > { %p1233_p8 = pnand %p804_p5, %p207_p7  ;;  %s219_s11 = sshll.u32 %s1144_s10, 4  ;;  %s220_s11 = int_to_ptr.vmem [resolvable:$true] %s219_s11 }
  0x11   : > { %s1145_s13 = smov [#allocation7]   ;;  %s1005_s15 = scalar_lea.vmem %s220_s11, 2048 }
  0x12   : > { %s1398_s9 = scalar_select %p1233_p8, 1, 0 }
  0x13   : > { %p888_p9 = pneg %p1233_p8  ;;  %s235_s14 = sshll.u32 %s1145_s13, 4  ;;  %s236_s14 = int_to_ptr.vmem [resolvable:$true] %s235_s14 }
  0x14   : > { %p1006_p13 = scmp.ne.s32.totalorder %s220_s11, %s1005_s15  ;;  %p1013_p5 = scmp.lt.s32.totalorder %s220_s11, %s220_s11 }
  0x15   : > { %p1242_p11 = pnand %p888_p9, %p1390_p1  ;;  %p1014_p7 = scmp.lt.s32.totalorder %s1005_s15, %s1005_s15 }
  0x17   : > { %p996_p12 = pneg %p1242_p11  ;;  %p1015_p10 = por %p1014_p7, %p1013_p5 }
  0x19   : > { %p1008_p0 = pnand %p1006_p13, %p996_p12 }
  0x1b   : > { %p1009_p3 = pneg %p1008_p0 }
  0x1d   : > { %p1016_p9 = pnand %p1015_p10, %p1009_p3 }
  0x1f   : > { %1019 = shalt.err (!%p1016_p9)
}
  0x20   : > { %s1146_s16 = smov 128   ;;  %s1147_s17 = smov 8  }
  0x21   : > { %s1400_s1 = sld [smem:[#allocation12_spill]]  ;;  %s1031_s20 = scalar_lea.vmem %s236_s14, 2048 }
  0x22   : > { %p1032_p1 = scmp.ne.s32.totalorder %s236_s14, %s1031_s20  ;;  %p1039_p2 = scmp.lt.s32.totalorder %s236_s14, %s236_s14 }
  0x23   : > { %p1040_p6 = scmp.lt.s32.totalorder %s1031_s20, %s1031_s20 }
  0x24   : > { %p1034_p13 = pnand %p1032_p1, %p996_p12 }
  0x25   : > { %p1041_p5 = por %p1040_p6, %p1039_p2 }
  0x26   : > { %p1035_p0 = pneg %p1034_p13 }
  0x27   : > { %891 = dma.hbm_to_vmem [thread:$0]  (!%p1242_p11), %s1400_s1, 2048, %s220_s11, [#allocation6], %s1146_s16, %s1146_s16, %s1147_s17  }
  0x28   : > { %p1042_p10 = pnand %p1041_p5, %p1035_p0 }
  0x2a   : > { %1045 = shalt.err (!%p1042_p10)
}
  0x2b   : > { %s1148_s21 = smov 64   ;;  %s1149_s22 = smov 4  }
  0x2c   : > { %s1401_s3 = sld [smem:[#allocation13_spill]]  ;;  %s1265_s10 = sadd.s32 1, %s1142_s27  }
  0x2d   : > { %s28_s11 = ssub.s32 %s1142_s27, %s1265_s10  ;;  %s31_s13 = sadd.s32 1, %s1138_s26 }
  0x2e   : > { %p29_p1 = scmp.eq.s32.totalorder %s28_s11, 0  ;;  %p38_p2 = scmp.ne.s32.totalorder %s1138_s26, %s1134_s25 }
  0x2f   : > { %p39_p6 = scmp.eq.s32.totalorder %s1142_s27, 0  ;;  %p1402_p3 = scmp.eq.s32.totalorder %s1214_s28, 1 }
  0x30   : > { %s1274_s15 = scalar_select %p29_p1, %s1138_s26, %s31_s13  }
  0x31   : > { %p40_p12 = por %p39_p6, %p38_p2  ;;  %p1278_p7 = por %p1402_p3, %p38_p2 }
  0x32   : > { %894 = dma.hbm_to_vmem [thread:$0]  (!%p1242_p11), %s1401_s3, 2048, %s236_s14, [#allocation6], %s1148_s21, %s1148_s21, %s1149_s22  }
  0x33   : > { %s1403_s16 = scalar_select %p1278_p7, 1, 0 }
  0x34   : > { %p905_p9 = scmp.lt.s32.totalorder %s1142_s27, 2  ;;  %s258_s12 = sand.u32 1, %s1138_s26  }
  0x35   : > { %s808_s17 = sshll.u32 %s258_s12, 3  ;;  %s809_s14 = sshll.u32 %s1142_s27, 7 }
  0x36   : > { %s1288_s20 = scalar_lea.hbm %s1382_s0, %s809_s14  ;;  %s262_s21 = scalar_lea.vmem [#allocation2], %s808_s17 }
  0x37   : > { %s269_s22 = sshll.u32 %s262_s21, 4  ;;  %p1290_p11 = pnand %p905_p9, %p40_p12  ;;  %s270_s22 = int_to_ptr.vmem [resolvable:$true] %s269_s22 }
  0x38   : > { %s259_s29 = scalar_lea.sflag [#allocation3], %s258_s12  ;;  %s1046_s11 = scalar_lea.hbm %s1288_s20, 128 }
  0x39   : > { %p1047_p13 = scmp.ne.s32.totalorder %s1288_s20, %s1046_s11  ;;  %p1048_p0 = pneg %p1290_p11 }
  0x3a   : > { %s1051_s18 = scalar_lea.hbm %s1382_s0, 256  ;;  %p1052_p1 = scmp.lt.s32.totalorder %s1288_s20, %s1382_s0 }
  0x3b   : > { %p1049_p5 = pnand %p1048_p0, %p1047_p13  ;;  %p1053_p2 = scmp.lt.s32.totalorder %s1051_s18, %s1046_s11 }
  0x3d   : > { %p1050_p10 = pneg %p1049_p5  ;;  %p1054_p6 = por %p1053_p2, %p1052_p1 }
  0x3f   : > { %p1055_p12 = pnand %p1054_p6, %p1050_p10 }
  0x41   : > { %1058 = shalt.err (!%p1055_p12)
}
  0x42   : > { %s1059_s21 = scalar_lea.vmem %s270_s22, 128  ;;  %s1150_s12 = smov [#allocation2]  }
  0x43   : > { %p1060_p3 = scmp.ne.s32.totalorder %s270_s22, %s1059_s21  ;;  %s1064_s1 = sshll.u32 %s1150_s12, 4  ;;  %s1065_s1 = int_to_ptr.vmem [resolvable:$false] %s1064_s1 }
  0x44   : > { %s1066_s3 = scalar_lea.vmem %s1065_s1, 256  ;;  %p1067_p13 = scmp.lt.s32.totalorder %s270_s22, %s1065_s1 }
  0x45   : > { %p1062_p9 = pnand %p1060_p3, %p1048_p0  ;;  %p1068_p5 = scmp.lt.s32.totalorder %s1066_s3, %s1059_s21 }
  0x47   : > { %p1063_p7 = pneg %p1062_p9  ;;  %p1069_p4 = por %p1068_p5, %p1067_p13 }
  0x49   : > { %p1070_p8 = pnand %p1069_p4, %p1063_p7 }
  0x4b   : > { %1073 = shalt.err (!%p1070_p8)
}
  0x4c   : > { %898 = dma.hbm_to_vmem [thread:$0]  (!%p1290_p11), %s1288_s20, 128, %s270_s22, %s259_s29  }
  0x4d   : > { %p1405_p10 = scmp.ne.s32.totalorder %s1398_s9, 0 }
  0x4e   : > { %s1311_s11 = sand.u32 (!%p1405_p10), 1, %s1134_s25   ;;  %p1406_p4 = scmp.ne.s32.totalorder (!%p1405_p10), %s1396_s30, 0 }
  0x4f   : > { %278 = sbr.rel (%p1405_p10) target bundleno = 869 (0x365), region = 48  ;;  %s811_s13 = sshll.u32 (!%p1405_p10), %s1311_s11, 3 }
  0x50   : > { %s281_s1 = scalar_lea.sflag (!%p1405_p10), [#allocation3], %s1311_s11  ;;  %s1317_s3 = scalar_lea.vmem (!%p1405_p10), [#allocation2], %s811_s13 }
  0x54   : > { %1117 = dma.done.wait (%p1406_p4), %s281_s1, 128  }
  0x55   : > { %1119 = vsyncadd (%p1406_p4), %s281_s1, 4294967168  ;;  %p1407_p8 = scmp.eq.s32.totalorder %s1214_s28, 0 }
  0x57   : > { %1121 = dma.done.wait (%p1407_p8), [#allocation6], 4096   ;;  %p1408_p7 = pmov %p1407_p8 }
  0x58   : > { %v1151_v0 = vmov 0   ;;  %v948_v1 = vld [vmem:[#allocation5 + $0x74] ss:$8 sps:$4 sm:$0xff]   ;;  %v950_v2 = vld [vmem:[#allocation5 + $0x70] ss:$8 sps:$4 sm:$0xff]   ;;  %v976_v23 = vld [vmem:[#allocation7 + $0x68] sm:$0xff]   ;;  %v344_v35 = vlaneseq }
  0x59   : > { %1123 = vsyncadd (%p1408_p7), [#allocation6], 4294963200  ;;  %466 = vmatprep.mubr.bf16.mxu0 %v1151_v0  ;;  %434 = vmatprep.subr.bf16.mxu0 %v948_v1  ;;  %v951_v3 = vld [vmem:[#allocation5 + $0x64] ss:$8 sps:$4 sm:$0xff]   ;;  %v953_v4 = vld [vmem:[#allocation5 + $0x60] ss:$8 sps:$4 sm:$0xff]  }
  0x5a   : > { %435 = vmatpush1.bf16.msra.mxu0 %v950_v2  ;;  %v954_v5 = vld [vmem:[#allocation5 + $0x54] ss:$8 sps:$4 sm:$0xff]   ;;  %v956_v6 = vld [vmem:[#allocation5 + $0x50] ss:$8 sps:$4 sm:$0xff]   ;;  %v957_v7 = vld [vmem:[#allocation5 + $0x44] ss:$8 sps:$4 sm:$0xff]  }
  0x5b   : > { %436 = vmatprep.subr.bf16.mxu0 %v951_v3  ;;  %v959_v8 = vld [vmem:[#allocation5 + $0x40] ss:$8 sps:$4 sm:$0xff]   ;;  %v960_v9 = vld [vmem:[#allocation5 + $0x34] ss:$8 sps:$4 sm:$0xff]   ;;  %v962_v10 = vld [vmem:[#allocation5 + $0x30] ss:$8 sps:$4 sm:$0xff]  }
  0x5c   : > { %v963_v11 = vld [vmem:[#allocation5 + $0x24] ss:$8 sps:$4 sm:$0xff]   ;;  %v965_v12 = vld [vmem:[#allocation5 + $0x20] ss:$8 sps:$4 sm:$0xff]   ;;  %v966_v13 = vld [vmem:[#allocation5 + $0x14] ss:$8 sps:$4 sm:$0xff]  }
  0x5d   : > { %v968_v14 = vld [vmem:[#allocation5 + $0x10] ss:$8 sps:$4 sm:$0xff]   ;;  %v969_v15 = vld [vmem:[#allocation5 + $0x4] ss:$8 sps:$4 sm:$0xff]   ;;  %v971_v16 = vld [vmem:[#allocation5] ss:$8 sps:$4 sm:$0xff]  }
  0x5e   : > { %437 = vmatpush1.bf16.msra.mxu0 %v953_v4  ;;  %v1328_v17 = vld [vmem:[%s1317_s3] sm:$0xff]  ;;  %v977_v24 = vld [vmem:[#allocation7 + $0x28] sm:$0xff]   ;;  %v978_v25 = vld [vmem:[#allocation7 + $0x60] sm:$0xff]   ;;  %v345_v36 = vshrl.u32 %v344_v35, 7  ;;  %s851_s19 = sshll.u32 %s1214_s28, 7  ;;  %s322_s17 = scalar_lea.vmem [#allocation8], %s811_s13 }
  0x5f   : > { %438 = vmatprep.subr.bf16.mxu0 %v954_v5  ;;  %v325_v18 = vpack.c.bf16 %v1328_v17, %v1328_v17  ;;  %v972_v19 = vld [vmem:[#allocation7 + $0x78] sm:$0xff]   ;;  %v974_v21 = vld [vmem:[#allocation7 + $0x70] sm:$0xff]   ;;  %v979_v26 = vld [vmem:[#allocation7 + $0x20] sm:$0xff]   ;;  %s714_s21 = sshll.u32 %s322_s17, 4  ;;  %s712_s3 = scalar_lea.hbm %s1389_s7, %s851_s19  ;;  %s715_s21 = int_to_ptr.vmem [resolvable:$true] %s714_s21 }
  0x60   : > { %v973_v20 = vld [vmem:[#allocation7 + $0x38] sm:$0xff]   ;;  %854 = vmatprep.subr.bf16.mxu1 %v972_v19  ;;  %v975_v22 = vld [vmem:[#allocation7 + $0x30] sm:$0xff]   ;;  %v984_v31 = vld [vmem:[#allocation7 + $0x48] sm:$0xff]   ;;  %v346_v37 = vsub.s32 0, %v345_v36  ;;  %v350_v39 = vsub.s32 1, %v345_v36  ;;  %s701_s30 = scalar_lea.sflag [#allocation4], %s1311_s11 }
  0x61   : > { %855 = vmatpush3.bf16.msra.mxu1 %v973_v20  ;;  %v980_v27 = vld [vmem:[#allocation7 + $0x58] sm:$0xff]   ;;  %v982_v29 = vld [vmem:[#allocation7 + $0x50] sm:$0xff]   ;;  %v985_v32 = vld [vmem:[#allocation7 + $0x8] sm:$0xff]   ;;  %s1074_s9 = scalar_lea.vmem %s715_s21, 128  ;;  %p1409_p0 = scmp.ne.s32.totalorder %s1403_s16, 0 }
  0x62   : > { %439 = vmatpush1.bf16.msra.mxu0 %v956_v6  ;;  %856 = vmatprep.subr.bf16.mxu1 %v974_v21  ;;  %v981_v28 = vld [vmem:[#allocation7 + $0x18] sm:$0xff]   ;;  %v983_v30 = vld [vmem:[#allocation7 + $0x10] sm:$0xff]   ;;  %v986_v33 = vld [vmem:[#allocation7 + $0x40] sm:$0xff]   ;;  %p1075_p11 = scmp.ne.s32.totalorder %s715_s21, %s1074_s9  ;;  %s1152_s20 = smov [#allocation8]  }
  0x63   : > { %440 = vmatprep.subr.bf16.mxu0 %v957_v7  ;;  %v987_v34 = vld [vmem:[#allocation7] sm:$0xff]   ;;  %v342_v38 = vld [vmem:[%s1384_s2] sm:$0x3]  ;;  %s1078_s22 = sshll.u32 %s1152_s20, 4  ;;  %s1079_s22 = int_to_ptr.vmem [resolvable:$false] %s1078_s22 }
  0x64   : > { %v347_v40 = vrot.slane %v342_v38, %v346_v37  ;;  %v351_v41 = vrot.slane %v342_v38, %v350_v39  ;;  %v831_v5 = vld [vmem:[%s1386_s4] ss:$0 sm:$0xff]  ;;  %p1076_p1 = pnand %p1075_p11, %p1409_p0  ;;  %s1080_s28 = scalar_lea.vmem %s1079_s22, 256 }
  0x65   : > { %857 = vmatpush3.bf16.msra.mxu1 %v975_v22  ;;  %v848_v21 = vld [vmem:[%s1387_s5] ss:$0 sm:$0xff]  ;;  %p1081_p6 = scmp.lt.s32.totalorder %s715_s21, %s1079_s22  ;;  %p1082_p12 = scmp.lt.s32.totalorder %s1080_s28, %s1074_s9 }
  0x66   : > { %441 = vmatpush1.bf16.msra.mxu0 %v959_v8  ;;  %858 = vmatprep.subr.bf16.mxu1 %v976_v23  ;;  %p1077_p2 = pneg %p1076_p1 }
  0x67   : > { %442 = vmatprep.subr.bf16.mxu0 %v960_v9  ;;  %p1083_p3 = por %p1082_p12, %p1081_p6 }
  0x69   : > { %859 = vmatpush3.bf16.msra.mxu1 %v977_v24  ;;  %p1084_p9 = pnand %p1083_p3, %p1077_p2 }
  0x6a   : > { %443 = vmatpush1.bf16.msra.mxu0 %v962_v10  ;;  %860 = vmatprep.subr.bf16.mxu1 %v978_v25 }
  0x6b   : > { %444 = vmatprep.subr.bf16.mxu0 %v963_v11 }
  0x6d   : > { %861 = vmatpush3.bf16.msra.mxu1 %v979_v26 }
  0x6e   : > { %445 = vmatpush1.bf16.msra.mxu0 %v965_v12  ;;  %862 = vmatprep.subr.bf16.mxu1 %v980_v27 }
  0x6f   : > { %446 = vmatprep.subr.bf16.mxu0 %v966_v13 }
  0x71   : > { %863 = vmatpush3.bf16.msra.mxu1 %v981_v28 }
  0x72   : > { %447 = vmatpush1.bf16.msra.mxu0 %v968_v14  ;;  %864 = vmatprep.subr.bf16.mxu1 %v982_v29 }
  0x73   : > { %448 = vmatprep.subr.bf16.mxu0 %v969_v15 }
  0x75   : > { %865 = vmatpush3.bf16.msra.mxu1 %v983_v30 }
  0x76   : > { %449 = vmatpush1.bf16.msra.mxu0 %v971_v16  ;;  %866 = vmatprep.subr.bf16.mxu1 %v984_v31 }
  0x79   : > { %467 = vmatmul.mubr.bf16.vlgmr.msra.gmra.mxu0 %v325_v18  ;;  %867 = vmatpush3.bf16.msra.mxu1 %v985_v32 }
  0x7a   : > { %868 = vmatprep.subr.bf16.mxu1 %v986_v33 }
  0x7d   : > { %869 = vmatpush3.bf16.msra.mxu1 %v987_v34 }
 0x139   : > { %v468_v42 = vpop.f32.mrf.mxu0 }
 0x13a   : > { %v469_v43 = vadd.f32 %v468_v42, %v347_v40 }
 0x13b   : > { %v470_v44 = vpop.f32.mrf.mxu0 }
 0x13c   : > { %v475_v45 = vmul.f32 %v469_v43, %v469_v43  ;;  %v471_v46 = vadd.f32 %v470_v44, %v351_v41  ;;  %v485_v61 = vmul.f32 0.5, %v469_v43 }
 0x13d   : > { %v472_v47 = vpop.f32.mrf.mxu0 }
 0x13e   : > { %v477_v48 = vmul.f32 %v475_v45, %v469_v43  ;;  %v476_v49 = vmul.f32 %v471_v46, %v471_v46  ;;  %v486_v62 = vmul.f32 0.5, %v471_v46 }
 0x13f   : > { %v473_v50 = vpop.f32.mrf.mxu0 }
 0x140   : > { %v479_v51 = vmul.f32 0.044715, %v477_v48  ;;  %v478_v52 = vmul.f32 %v476_v49, %v471_v46 }
 0x142   : > { %v481_v53 = vadd.f32 %v479_v51, %v469_v43  ;;  %v480_v54 = vmul.f32 0.044715, %v478_v52 }
 0x144   : > { %v483_v55 = vmul.f32 0.7978846, %v481_v53  ;;  %v482_v56 = vadd.f32 %v480_v54, %v471_v46 }
 0x146   : > { %988 = vtanh.f32 %v483_v55  ;;  %v484_v57 = vmul.f32 0.7978846, %v482_v56 }
 0x148   : > { %990 = vtanh.f32 %v484_v57 }
 0x153   : > { %v989_v58 = vpop.eup %988 }
 0x154   : > { %v489_v59 = vadd.f32 1.0, %v989_v58 }
 0x155   : > { %v991_v60 = vpop.eup %990 }
 0x156   : > { %v490_v63 = vadd.f32 1.0, %v991_v60  ;;  %v491_v0 = vmul.f32 %v489_v59, %v485_v61 }
 0x158   : > { %v492_v1 = vmul.f32 %v490_v63, %v486_v62  ;;  %v493_v3 = vpack.c.bf16 %v491_v0, %v491_v0 }
 0x15a   : > { %v494_v2 = vpack.c.bf16 %v492_v1, %v492_v1 }
 0x15c   : > { %662 = vmatprep.mubr.bf16.mxu1 %v494_v2 }
 0x15d   : > { %663 = vmatmul.mubr.bf16.vlgmr.msra.gmra.mxu1 %v493_v3 }
 0x21d   : > { %v870_v4 = vpop.f32.mrf.mxu1 }
 0x21f   : > { %v871_v6 = vpop.f32.mrf.mxu1 }
 0x220   : > { %v872_v7 = vadd.f32 %v871_v6, %v870_v4 }
 0x221   : > { %v873_v8 = vpop.f32.mrf.mxu1 }
 0x222   : > { %v665_v9 = vadd.f32 %v872_v7, %v831_v5 }
 0x223   : > { %v874_v10 = vpop.f32.mrf.mxu1 }
 0x224   : > { %v670_v11 = vadd.f32 %v665_v9, %v1328_v17  ;;  %v849_v17 = vld [vmem:[%s1388_s6] ss:$0 sm:$0xff] }
 0x226   : > { %671 = vadd.xlane.f32.xlu0 %v670_v11 }
 0x2af   : > { %v672_v12 = vpop.xlane.xlu0 %671 }
 0x2b0   : > { %v674_v13 = vmul.f32 0.0078125, %v672_v12 }
 0x2b2   : > { %v675_v14 = vsub.f32 %v670_v11, %v674_v13 }
 0x2b4   : > { %v676_v15 = vmul.f32 %v675_v14, %v675_v14 }
 0x2b6   : > { %677 = vadd.xlane.f32.xlu0 %v676_v15 }
 0x33f   : > { %v678_v16 = vpop.xlane.xlu0 %677 }
 0x340   : > { %v679_v18 = vmul.f32 0.0078125, %v678_v16 }
 0x342   : > { %v680_v19 = vadd.f32 1e-12, %v679_v18 }
 0x344   : > { %992 = vrsqrt.f32 %v680_v19 }
 0x351   : > { %v993_v20 = vpop.eup %992 }
 0x352   : > { %v682_v22 = vmul.f32 %v993_v20, %v675_v14 }
 0x354   : > { %v690_v23 = vmul.f32 %v848_v21, %v682_v22 }
 0x356   : > { %v698_v24 = vadd.f32 %v849_v17, %v690_v23 }
 0x358   : > { %699 = vst [vmem:[%s322_s17] sm:$0xff] %v698_v24 }
 0x359   : > { %1087 = shalt.err (!%p1084_p9)
}
 0x35a   : > { %s1088_s13 = scalar_lea.hbm %s712_s3, 128  ;;  %s1092_s29 = scalar_lea.hbm %s1389_s7, 256 }
 0x35b   : > { %p1089_p13 = scmp.ne.s32.totalorder %s712_s3, %s1088_s13  ;;  %p1093_p4 = scmp.lt.s32.totalorder %s712_s3, %s1389_s7 }
 0x35c   : > { %p1094_p8 = scmp.lt.s32.totalorder %s1092_s29, %s1088_s13 }
 0x35d   : > { %p1090_p5 = pnand %p1089_p13, %p1409_p0 }
 0x35e   : > { %p1095_p7 = por %p1094_p8, %p1093_p4 }
 0x35f   : > { %p1091_p10 = pneg %p1090_p5 }
 0x361   : > { %p1096_p11 = pnand %p1095_p7, %p1091_p10 }
 0x363   : > { %1099 = shalt.err (!%p1096_p11)
}
 0x364   : > { %886 = dma.vmem_to_hbm [thread:$0]  (%p1409_p0), %s715_s21, 128, %s712_s3, %s701_s30  }
 0x365 PF: > { %s726_s19 = sand.u32 1, %s1130_s24   ;;  %p1410_p1 = scmp.ne.s32.totalorder %s1397_s8, 0 }
 0x366   : > { %p1411_p2 = scmp.ge.s32.totalorder %s1142_s27, 2  ;;  %s727_s17 = scalar_lea.sflag [#allocation4], %s726_s19 }
 0x368   : > { %p900_p6 = pnand %p1411_p2, %p1410_p1 }
 0x36a   : > { %p901_p12 = pneg %p900_p6 }
 0x36c   : > { %1125 = dma.done.wait (%p901_p12), %s727_s17, 128  }
 0x36d   : > { %1127 = vsyncadd (%p901_p12), %s727_s17, 4294967168  ;;  %p21_p3 = scmp.ge.s32.totalorder %s1265_s10, 4   ;;  %s1412_s24 = smov %s1134_s25 }
 0x36e   : > { %s1413_s25 = smov %s1138_s26  ;;  %s1414_s26 = smov %s1274_s15 }
 0x36f   : > { %s1415_s27 = smov %s1265_s10  ;;  %23 = sbr.rel (!%p21_p3) target bundleno = 9 (0x9), region = 101 }
 0x374   :  { %732 = vsyncpa [#allocation3], 1 }
 0x375   :  { %734 = vsyncpa [#allocation3 + $0x1], 1 }
 0x376   :  { %735 = vsyncpa [#allocation6], 1 }
 0x377   :  { %736 = vsyncpa [#allocation4], 1 }
 0x378   :  { %738 = vsyncpa [#allocation4 + $0x1], 1 }

// kernel: tpu_custom_call.1
= control target key start
LH: loop header
LB: loop body
LE: loop exit
PB: predicated region body
PF: predicated region fallthrough
CT: control target
= control target key end

     0   :  { %s1382_s0 = inlined_call_operand.hbm [shape: f32[16,128], index: 0, kind: input, shape index: {}]   ;;  %s1383_s1 = inlined_call_operand.hbm [shape: bf16[128,256], index: 1, kind: input, shape index: {}]   ;;  %s1384_s2 = inlined_call_operand.vmem [shape: f32[1,256], index: 2, kind: input, shape index: {}]   ;;  %s1385_s3 = inlined_call_operand.hbm [shape: bf16[256,128], index: 3, kind: input, shape index: {}]   ;;  %s1386_s4 = inlined_call_operand.vmem [shape: f32[1,128], index: 4, kind: input, shape index: {}]   ;;  %s1387_s5 = inlined_call_operand.vmem [shape: f32[1,128], index: 5, kind: input, shape index: {}]   ;;  %s1388_s6 = inlined_call_operand.vmem [shape: f32[1,128], index: 6, kind: input, shape index: {}]   ;;  %s1389_s7 = inlined_call_operand.hbm [shape: f32[16,128], index: 7, kind: output, shape index: {}]  }
   0x1   :  { %1394 = sst [smem:[#allocation12_spill]] %s1383_s1 }
   0x2   :  { %1395 = sst [smem:[#allocation13_spill]] %s1385_s3 }
   0x3   :  { %12 = vsyncpa [#allocation3], 0 }
   0x4   :  { %14 = vsyncpa [#allocation3 + $0x1], 0 }
   0x5   :  { %15 = vsyncpa [#allocation6], 0 }
   0x6   :  { %16 = vsyncpa [#allocation4], 0 }
   0x7   :  { %18 = vsyncpa [#allocation4 + $0x1], 0  ;;  %s1193_s24 = smov 0   ;;  %s1195_s25 = smov 0  }
   0x8   :  { %s1197_s26 = smov 0   ;;  %s1199_s27 = smov 0  }
   0x9 LB: > { %s1214_s28 = sadd.s32 4294967295, %s1142_s27   ;;  %s803_s29 = sadd.s32 4294967294, %s1142_s27   ;;  %s1142_s27 = sphi %s1199_s27, %s1415_s27   ;;  %s1138_s26 = sphi %s1197_s26, %s1414_s26   ;;  %s1134_s25 = sphi %s1195_s25, %s1413_s25   ;;  %s1130_s24 = sphi %s1193_s24, %s1412_s24  }
   0xa   : > { %p44_p0 = scmp.ne.s32.totalorder %s1134_s25, %s1130_s24  ;;  %p1390_p1 = scmp.eq.s32.totalorder %s1214_s28, 0 }
   0xb   : > { %p200_p3 = scmp.eq.s32.totalorder %s803_s29, 1  ;;  %p804_p5 = scmp.ge.s32.totalorder %s1142_s27, 1 }
   0xc   : > { %p1223_p4 = por %p1390_p1, %p44_p0  ;;  %p207_p7 = scmp.lt.s32.totalorder %s1142_s27, 3 }
   0xd   : > { %p1228_p6 = por %p200_p3, %p44_p0  ;;  %s1144_s10 = smov [#allocation5]  }
   0xe   : > { %s1396_s30 = scalar_select %p1223_p4, 1, 0 }
   0xf   : > { %s1397_s8 = scalar_select %p1228_p6, 1, 0 }
  0x10   : > { %p1233_p8 = pnand %p804_p5, %p207_p7  ;;  %s219_s11 = sshll.u32 %s1144_s10, 4  ;;  %s220_s11 = int_to_ptr.vmem [resolvable:$true] %s219_s11 }
  0x11   : > { %s1145_s13 = smov [#allocation7]   ;;  %s1005_s15 = scalar_lea.vmem %s220_s11, 2048 }
  0x12   : > { %s1398_s9 = scalar_select %p1233_p8, 1, 0 }
  0x13   : > { %p888_p9 = pneg %p1233_p8  ;;  %s235_s14 = sshll.u32 %s1145_s13, 4  ;;  %s236_s14 = int_to_ptr.vmem [resolvable:$true] %s235_s14 }
  0x14   : > { %p1006_p13 = scmp.ne.s32.totalorder %s220_s11, %s1005_s15  ;;  %p1013_p5 = scmp.lt.s32.totalorder %s220_s11, %s220_s11 }
  0x15   : > { %p1242_p11 = pnand %p888_p9, %p1390_p1  ;;  %p1014_p7 = scmp.lt.s32.totalorder %s1005_s15, %s1005_s15 }
  0x17   : > { %p996_p12 = pneg %p1242_p11  ;;  %p1015_p10 = por %p1014_p7, %p1013_p5 }
  0x19   : > { %p1008_p0 = pnand %p1006_p13, %p996_p12 }
  0x1b   : > { %p1009_p3 = pneg %p1008_p0 }
  0x1d   : > { %p1016_p9 = pnand %p1015_p10, %p1009_p3 }
  0x1f   : > { %1019 = shalt.err (!%p1016_p9)
}
  0x20   : > { %s1146_s16 = smov 128   ;;  %s1147_s17 = smov 8  }
  0x21   : > { %s1400_s1 = sld [smem:[#allocation12_spill]]  ;;  %s1031_s20 = scalar_lea.vmem %s236_s14, 2048 }
  0x22   : > { %p1032_p1 = scmp.ne.s32.totalorder %s236_s14, %s1031_s20  ;;  %p1039_p2 = scmp.lt.s32.totalorder %s236_s14, %s236_s14 }
  0x23   : > { %p1040_p6 = scmp.lt.s32.totalorder %s1031_s20, %s1031_s20 }
  0x24   : > { %p1034_p13 = pnand %p1032_p1, %p996_p12 }
  0x25   : > { %p1041_p5 = por %p1040_p6, %p1039_p2 }
  0x26   : > { %p1035_p0 = pneg %p1034_p13 }
  0x27   : > { %891 = dma.hbm_to_vmem [thread:$0]  (!%p1242_p11), %s1400_s1, 2048, %s220_s11, [#allocation6], %s1146_s16, %s1146_s16, %s1147_s17  }
  0x28   : > { %p1042_p10 = pnand %p1041_p5, %p1035_p0 }
  0x2a   : > { %1045 = shalt.err (!%p1042_p10)
}
  0x2b   : > { %s1148_s21 = smov 64   ;;  %s1149_s22 = smov 4  }
  0x2c   : > { %s1401_s3 = sld [smem:[#allocation13_spill]]  ;;  %s1265_s10 = sadd.s32 1, %s1142_s27  }
  0x2d   : > { %s28_s11 = ssub.s32 %s1142_s27, %s1265_s10  ;;  %s31_s13 = sadd.s32 1, %s1138_s26 }
  0x2e   : > { %p29_p1 = scmp.eq.s32.totalorder %s28_s11, 0  ;;  %p38_p2 = scmp.ne.s32.totalorder %s1138_s26, %s1134_s25 }
  0x2f   : > { %p39_p6 = scmp.eq.s32.totalorder %s1142_s27, 0  ;;  %p1402_p3 = scmp.eq.s32.totalorder %s1214_s28, 1 }
  0x30   : > { %s1274_s15 = scalar_select %p29_p1, %s1138_s26, %s31_s13  }
  0x31   : > { %p40_p12 = por %p39_p6, %p38_p2  ;;  %p1278_p7 = por %p1402_p3, %p38_p2 }
  0x32   : > { %894 = dma.hbm_to_vmem [thread:$0]  (!%p1242_p11), %s1401_s3, 2048, %s236_s14, [#allocation6], %s1148_s21, %s1148_s21, %s1149_s22  }
  0x33   : > { %s1403_s16 = scalar_select %p1278_p7, 1, 0 }
  0x34   : > { %p905_p9 = scmp.lt.s32.totalorder %s1142_s27, 2  ;;  %s258_s12 = sand.u32 1, %s1138_s26  }
  0x35   : > { %s808_s17 = sshll.u32 %s258_s12, 3  ;;  %s809_s14 = sshll.u32 %s1142_s27, 7 }
  0x36   : > { %s1288_s20 = scalar_lea.hbm %s1382_s0, %s809_s14  ;;  %s262_s21 = scalar_lea.vmem [#allocation2], %s808_s17 }
  0x37   : > { %s269_s22 = sshll.u32 %s262_s21, 4  ;;  %p1290_p11 = pnand %p905_p9, %p40_p12  ;;  %s270_s22 = int_to_ptr.vmem [resolvable:$true] %s269_s22 }
  0x38   : > { %s259_s29 = scalar_lea.sflag [#allocation3], %s258_s12  ;;  %s1046_s11 = scalar_lea.hbm %s1288_s20, 128 }
  0x39   : > { %p1047_p13 = scmp.ne.s32.totalorder %s1288_s20, %s1046_s11  ;;  %p1048_p0 = pneg %p1290_p11 }
  0x3a   : > { %s1051_s18 = scalar_lea.hbm %s1382_s0, 256  ;;  %p1052_p1 = scmp.lt.s32.totalorder %s1288_s20, %s1382_s0 }
  0x3b   : > { %p1049_p5 = pnand %p1048_p0, %p1047_p13  ;;  %p1053_p2 = scmp.lt.s32.totalorder %s1051_s18, %s1046_s11 }
  0x3d   : > { %p1050_p10 = pneg %p1049_p5  ;;  %p1054_p6 = por %p1053_p2, %p1052_p1 }
  0x3f   : > { %p1055_p12 = pnand %p1054_p6, %p1050_p10 }
  0x41   : > { %1058 = shalt.err (!%p1055_p12)
}
  0x42   : > { %s1059_s21 = scalar_lea.vmem %s270_s22, 128  ;;  %s1150_s12 = smov [#allocation2]  }
  0x43   : > { %p1060_p3 = scmp.ne.s32.totalorder %s270_s22, %s1059_s21  ;;  %s1064_s1 = sshll.u32 %s1150_s12, 4  ;;  %s1065_s1 = int_to_ptr.vmem [resolvable:$false] %s1064_s1 }
  0x44   : > { %s1066_s3 = scalar_lea.vmem %s1065_s1, 256  ;;  %p1067_p13 = scmp.lt.s32.totalorder %s270_s22, %s1065_s1 }
  0x45   : > { %p1062_p9 = pnand %p1060_p3, %p1048_p0  ;;  %p1068_p5 = scmp.lt.s32.totalorder %s1066_s3, %s1059_s21 }
  0x47   : > { %p1063_p7 = pneg %p1062_p9  ;;  %p1069_p4 = por %p1068_p5, %p1067_p13 }
  0x49   : > { %p1070_p8 = pnand %p1069_p4, %p1063_p7 }
  0x4b   : > { %1073 = shalt.err (!%p1070_p8)
}
  0x4c   : > { %898 = dma.hbm_to_vmem [thread:$0]  (!%p1290_p11), %s1288_s20, 128, %s270_s22, %s259_s29  }
  0x4d   : > { %p1405_p10 = scmp.ne.s32.totalorder %s1398_s9, 0 }
  0x4e   : > { %s1311_s11 = sand.u32 (!%p1405_p10), 1, %s1134_s25   ;;  %p1406_p4 = scmp.ne.s32.totalorder (!%p1405_p10), %s1396_s30, 0 }
  0x4f   : > { %278 = sbr.rel (%p1405_p10) target bundleno = 869 (0x365), region = 48  ;;  %s811_s13 = sshll.u32 (!%p1405_p10), %s1311_s11, 3 }
  0x50   : > { %s281_s1 = scalar_lea.sflag (!%p1405_p10), [#allocation3], %s1311_s11  ;;  %s1317_s3 = scalar_lea.vmem (!%p1405_p10), [#allocation2], %s811_s13 }
  0x54   : > { %1117 = dma.done.wait (%p1406_p4), %s281_s1, 128  }
  0x55   : > { %1119 = vsyncadd (%p1406_p4), %s281_s1, 4294967168  ;;  %p1407_p8 = scmp.eq.s32.totalorder %s1214_s28, 0 }
  0x57   : > { %1121 = dma.done.wait (%p1407_p8), [#allocation6], 4096   ;;  %p1408_p7 = pmov %p1407_p8 }
  0x58   : > { %v1151_v0 = vmov 0   ;;  %v948_v1 = vld [vmem:[#allocation5 + $0x74] ss:$8 sps:$4 sm:$0xff]   ;;  %v950_v2 = vld [vmem:[#allocation5 + $0x70] ss:$8 sps:$4 sm:$0xff]   ;;  %v976_v23 = vld [vmem:[#allocation7 + $0x68] sm:$0xff]   ;;  %v344_v35 = vlaneseq }
  0x59   : > { %1123 = vsyncadd (%p1408_p7), [#allocation6], 4294963200  ;;  %466 = vmatprep.mubr.bf16.mxu0 %v1151_v0  ;;  %434 = vmatprep.subr.bf16.mxu0 %v948_v1  ;;  %v951_v3 = vld [vmem:[#allocation5 + $0x64] ss:$8 sps:$4 sm:$0xff]   ;;  %v953_v4 = vld [vmem:[#allocation5 + $0x60] ss:$8 sps:$4 sm:$0xff]  }
  0x5a   : > { %435 = vmatpush1.bf16.msra.mxu0 %v950_v2  ;;  %v954_v5 = vld [vmem:[#allocation5 + $0x54] ss:$8 sps:$4 sm:$0xff]   ;;  %v956_v6 = vld [vmem:[#allocation5 + $0x50] ss:$8 sps:$4 sm:$0xff]   ;;  %v957_v7 = vld [vmem:[#allocation5 + $0x44] ss:$8 sps:$4 sm:$0xff]  }
  0x5b   : > { %436 = vmatprep.subr.bf16.mxu0 %v951_v3  ;;  %v959_v8 = vld [vmem:[#allocation5 + $0x40] ss:$8 sps:$4 sm:$0xff]   ;;  %v960_v9 = vld [vmem:[#allocation5 + $0x34] ss:$8 sps:$4 sm:$0xff]   ;;  %v962_v10 = vld [vmem:[#allocation5 + $0x30] ss:$8 sps:$4 sm:$0xff]  }
  0x5c   : > { %v963_v11 = vld [vmem:[#allocation5 + $0x24] ss:$8 sps:$4 sm:$0xff]   ;;  %v965_v12 = vld [vmem:[#allocation5 + $0x20] ss:$8 sps:$4 sm:$0xff]   ;;  %v966_v13 = vld [vmem:[#allocation5 + $0x14] ss:$8 sps:$4 sm:$0xff]  }
  0x5d   : > { %v968_v14 = vld [vmem:[#allocation5 + $0x10] ss:$8 sps:$4 sm:$0xff]   ;;  %v969_v15 = vld [vmem:[#allocation5 + $0x4] ss:$8 sps:$4 sm:$0xff]   ;;  %v971_v16 = vld [vmem:[#allocation5] ss:$8 sps:$4 sm:$0xff]  }
  0x5e   : > { %437 = vmatpush1.bf16.msra.mxu0 %v953_v4  ;;  %v1328_v17 = vld [vmem:[%s1317_s3] sm:$0xff]  ;;  %v977_v24 = vld [vmem:[#allocation7 + $0x28] sm:$0xff]   ;;  %v978_v25 = vld [vmem:[#allocation7 + $0x60] sm:$0xff]   ;;  %v345_v36 = vshrl.u32 %v344_v35, 7  ;;  %s851_s19 = sshll.u32 %s1214_s28, 7  ;;  %s322_s17 = scalar_lea.vmem [#allocation8], %s811_s13 }
  0x5f   : > { %438 = vmatprep.subr.bf16.mxu0 %v954_v5  ;;  %v325_v18 = vpack.c.bf16 %v1328_v17, %v1328_v17  ;;  %v972_v19 = vld [vmem:[#allocation7 + $0x78] sm:$0xff]   ;;  %v974_v21 = vld [vmem:[#allocation7 + $0x70] sm:$0xff]   ;;  %v979_v26 = vld [vmem:[#allocation7 + $0x20] sm:$0xff]   ;;  %s714_s21 = sshll.u32 %s322_s17, 4  ;;  %s712_s3 = scalar_lea.hbm %s1389_s7, %s851_s19  ;;  %s715_s21 = int_to_ptr.vmem [resolvable:$true] %s714_s21 }
  0x60   : > { %v973_v20 = vld [vmem:[#allocation7 + $0x38] sm:$0xff]   ;;  %854 = vmatprep.subr.bf16.mxu1 %v972_v19  ;;  %v975_v22 = vld [vmem:[#allocation7 + $0x30] sm:$0xff]   ;;  %v984_v31 = vld [vmem:[#allocation7 + $0x48] sm:$0xff]   ;;  %v346_v37 = vsub.s32 0, %v345_v36  ;;  %v350_v39 = vsub.s32 1, %v345_v36  ;;  %s701_s30 = scalar_lea.sflag [#allocation4], %s1311_s11 }
  0x61   : > { %855 = vmatpush3.bf16.msra.mxu1 %v973_v20  ;;  %v980_v27 = vld [vmem:[#allocation7 + $0x58] sm:$0xff]   ;;  %v982_v29 = vld [vmem:[#allocation7 + $0x50] sm:$0xff]   ;;  %v985_v32 = vld [vmem:[#allocation7 + $0x8] sm:$0xff]   ;;  %s1074_s9 = scalar_lea.vmem %s715_s21, 128  ;;  %p1409_p0 = scmp.ne.s32.totalorder %s1403_s16, 0 }
  0x62   : > { %439 = vmatpush1.bf16.msra.mxu0 %v956_v6  ;;  %856 = vmatprep.subr.bf16.mxu1 %v974_v21  ;;  %v981_v28 = vld [vmem:[#allocation7 + $0x18] sm:$0xff]   ;;  %v983_v30 = vld [vmem:[#allocation7 + $0x10] sm:$0xff]   ;;  %v986_v33 = vld [vmem:[#allocation7 + $0x40] sm:$0xff]   ;;  %p1075_p11 = scmp.ne.s32.totalorder %s715_s21, %s1074_s9  ;;  %s1152_s20 = smov [#allocation8]  }
  0x63   : > { %440 = vmatprep.subr.bf16.mxu0 %v957_v7  ;;  %v987_v34 = vld [vmem:[#allocation7] sm:$0xff]   ;;  %v342_v38 = vld [vmem:[%s1384_s2] sm:$0x3]  ;;  %s1078_s22 = sshll.u32 %s1152_s20, 4  ;;  %s1079_s22 = int_to_ptr.vmem [resolvable:$false] %s1078_s22 }
  0x64   : > { %v347_v40 = vrot.slane %v342_v38, %v346_v37  ;;  %v351_v41 = vrot.slane %v342_v38, %v350_v39  ;;  %v831_v5 = vld [vmem:[%s1386_s4] ss:$0 sm:$0xff]  ;;  %p1076_p1 = pnand %p1075_p11, %p1409_p0  ;;  %s1080_s28 = scalar_lea.vmem %s1079_s22, 256 }
  0x65   : > { %857 = vmatpush3.bf16.msra.mxu1 %v975_v22  ;;  %v848_v21 = vld [vmem:[%s1387_s5] ss:$0 sm:$0xff]  ;;  %p1081_p6 = scmp.lt.s32.totalorder %s715_s21, %s1079_s22  ;;  %p1082_p12 = scmp.lt.s32.totalorder %s1080_s28, %s1074_s9 }
  0x66   : > { %441 = vmatpush1.bf16.msra.mxu0 %v959_v8  ;;  %858 = vmatprep.subr.bf16.mxu1 %v976_v23  ;;  %p1077_p2 = pneg %p1076_p1 }
  0x67   : > { %442 = vmatprep.subr.bf16.mxu0 %v960_v9  ;;  %p1083_p3 = por %p1082_p12, %p1081_p6 }
  0x69   : > { %859 = vmatpush3.bf16.msra.mxu1 %v977_v24  ;;  %p1084_p9 = pnand %p1083_p3, %p1077_p2 }
  0x6a   : > { %443 = vmatpush1.bf16.msra.mxu0 %v962_v10  ;;  %860 = vmatprep.subr.bf16.mxu1 %v978_v25 }
  0x6b   : > { %444 = vmatprep.subr.bf16.mxu0 %v963_v11 }
  0x6d   : > { %861 = vmatpush3.bf16.msra.mxu1 %v979_v26 }
  0x6e   : > { %445 = vmatpush1.bf16.msra.mxu0 %v965_v12  ;;  %862 = vmatprep.subr.bf16.mxu1 %v980_v27 }
  0x6f   : > { %446 = vmatprep.subr.bf16.mxu0 %v966_v13 }
  0x71   : > { %863 = vmatpush3.bf16.msra.mxu1 %v981_v28 }
  0x72   : > { %447 = vmatpush1.bf16.msra.mxu0 %v968_v14  ;;  %864 = vmatprep.subr.bf16.mxu1 %v982_v29 }
  0x73   : > { %448 = vmatprep.subr.bf16.mxu0 %v969_v15 }
  0x75   : > { %865 = vmatpush3.bf16.msra.mxu1 %v983_v30 }
  0x76   : > { %449 = vmatpush1.bf16.msra.mxu0 %v971_v16  ;;  %866 = vmatprep.subr.bf16.mxu1 %v984_v31 }
  0x79   : > { %467 = vmatmul.mubr.bf16.vlgmr.msra.gmra.mxu0 %v325_v18  ;;  %867 = vmatpush3.bf16.msra.mxu1 %v985_v32 }
  0x7a   : > { %868 = vmatprep.subr.bf16.mxu1 %v986_v33 }
  0x7d   : > { %869 = vmatpush3.bf16.msra.mxu1 %v987_v34 }
 0x139   : > { %v468_v42 = vpop.f32.mrf.mxu0 }
 0x13a   : > { %v469_v43 = vadd.f32 %v468_v42, %v347_v40 }
 0x13b   : > { %v470_v44 = vpop.f32.mrf.mxu0 }
 0x13c   : > { %v475_v45 = vmul.f32 %v469_v43, %v469_v43  ;;  %v471_v46 = vadd.f32 %v470_v44, %v351_v41  ;;  %v485_v61 = vmul.f32 0.5, %v469_v43 }
 0x13d   : > { %v472_v47 = vpop.f32.mrf.mxu0 }
 0x13e   : > { %v477_v48 = vmul.f32 %v475_v45, %v469_v43  ;;  %v476_v49 = vmul.f32 %v471_v46, %v471_v46  ;;  %v486_v62 = vmul.f32 0.5, %v471_v46 }
 0x13f   : > { %v473_v50 = vpop.f32.mrf.mxu0 }
 0x140   : > { %v479_v51 = vmul.f32 0.044715, %v477_v48  ;;  %v478_v52 = vmul.f32 %v476_v49, %v471_v46 }
 0x142   : > { %v481_v53 = vadd.f32 %v479_v51, %v469_v43  ;;  %v480_v54 = vmul.f32 0.044715, %v478_v52 }
 0x144   : > { %v483_v55 = vmul.f32 0.7978846, %v481_v53  ;;  %v482_v56 = vadd.f32 %v480_v54, %v471_v46 }
 0x146   : > { %988 = vtanh.f32 %v483_v55  ;;  %v484_v57 = vmul.f32 0.7978846, %v482_v56 }
 0x148   : > { %990 = vtanh.f32 %v484_v57 }
 0x153   : > { %v989_v58 = vpop.eup %988 }
 0x154   : > { %v489_v59 = vadd.f32 1.0, %v989_v58 }
 0x155   : > { %v991_v60 = vpop.eup %990 }
 0x156   : > { %v490_v63 = vadd.f32 1.0, %v991_v60  ;;  %v491_v0 = vmul.f32 %v489_v59, %v485_v61 }
 0x158   : > { %v492_v1 = vmul.f32 %v490_v63, %v486_v62  ;;  %v493_v3 = vpack.c.bf16 %v491_v0, %v491_v0 }
 0x15a   : > { %v494_v2 = vpack.c.bf16 %v492_v1, %v492_v1 }
 0x15c   : > { %662 = vmatprep.mubr.bf16.mxu1 %v494_v2 }
 0x15d   : > { %663 = vmatmul.mubr.bf16.vlgmr.msra.gmra.mxu1 %v493_v3 }
 0x21d   : > { %v870_v4 = vpop.f32.mrf.mxu1 }
 0x21f   : > { %v871_v6 = vpop.f32.mrf.mxu1 }
 0x220   : > { %v872_v7 = vadd.f32 %v871_v6, %v870_v4 }
 0x221   : > { %v873_v8 = vpop.f32.mrf.mxu1 }
 0x222   : > { %v665_v9 = vadd.f32 %v872_v7, %v831_v5 }
 0x223   : > { %v874_v10 = vpop.f32.mrf.mxu1 }
 0x224   : > { %v670_v11 = vadd.f32 %v665_v9, %v1328_v17  ;;  %v849_v17 = vld [vmem:[%s1388_s6] ss:$0 sm:$0xff] }
 0x226   : > { %671 = vadd.xlane.f32.xlu0 %v670_v11 }
 0x2af   : > { %v672_v12 = vpop.xlane.xlu0 %671 }
 0x2b0   : > { %v674_v13 = vmul.f32 0.0078125, %v672_v12 }
 0x2b2   : > { %v675_v14 = vsub.f32 %v670_v11, %v674_v13 }
 0x2b4   : > { %v676_v15 = vmul.f32 %v675_v14, %v675_v14 }
 0x2b6   : > { %677 = vadd.xlane.f32.xlu0 %v676_v15 }
 0x33f   : > { %v678_v16 = vpop.xlane.xlu0 %677 }
 0x340   : > { %v679_v18 = vmul.f32 0.0078125, %v678_v16 }
 0x342   : > { %v680_v19 = vadd.f32 1e-12, %v679_v18 }
 0x344   : > { %992 = vrsqrt.f32 %v680_v19 }
 0x351   : > { %v993_v20 = vpop.eup %992 }
 0x352   : > { %v682_v22 = vmul.f32 %v993_v20, %v675_v14 }
 0x354   : > { %v690_v23 = vmul.f32 %v848_v21, %v682_v22 }
 0x356   : > { %v698_v24 = vadd.f32 %v849_v17, %v690_v23 }
 0x358   : > { %699 = vst [vmem:[%s322_s17] sm:$0xff] %v698_v24 }
 0x359   : > { %1087 = shalt.err (!%p1084_p9)
}
 0x35a   : > { %s1088_s13 = scalar_lea.hbm %s712_s3, 128  ;;  %s1092_s29 = scalar_lea.hbm %s1389_s7, 256 }
 0x35b   : > { %p1089_p13 = scmp.ne.s32.totalorder %s712_s3, %s1088_s13  ;;  %p1093_p4 = scmp.lt.s32.totalorder %s712_s3, %s1389_s7 }
 0x35c   : > { %p1094_p8 = scmp.lt.s32.totalorder %s1092_s29, %s1088_s13 }
 0x35d   : > { %p1090_p5 = pnand %p1089_p13, %p1409_p0 }
 0x35e   : > { %p1095_p7 = por %p1094_p8, %p1093_p4 }
 0x35f   : > { %p1091_p10 = pneg %p1090_p5 }
 0x361   : > { %p1096_p11 = pnand %p1095_p7, %p1091_p10 }
 0x363   : > { %1099 = shalt.err (!%p1096_p11)
}
 0x364   : > { %886 = dma.vmem_to_hbm [thread:$0]  (%p1409_p0), %s715_s21, 128, %s712_s3, %s701_s30  }
 0x365 PF: > { %s726_s19 = sand.u32 1, %s1130_s24   ;;  %p1410_p1 = scmp.ne.s32.totalorder %s1397_s8, 0 }
 0x366   : > { %p1411_p2 = scmp.ge.s32.totalorder %s1142_s27, 2  ;;  %s727_s17 = scalar_lea.sflag [#allocation4], %s726_s19 }
 0x368   : > { %p900_p6 = pnand %p1411_p2, %p1410_p1 }
 0x36a   : > { %p901_p12 = pneg %p900_p6 }
 0x36c   : > { %1125 = dma.done.wait (%p901_p12), %s727_s17, 128  }
 0x36d   : > { %1127 = vsyncadd (%p901_p12), %s727_s17, 4294967168  ;;  %p21_p3 = scmp.ge.s32.totalorder %s1265_s10, 4   ;;  %s1412_s24 = smov %s1134_s25 }
 0x36e   : > { %s1413_s25 = smov %s1138_s26  ;;  %s1414_s26 = smov %s1274_s15 }
 0x36f   : > { %s1415_s27 = smov %s1265_s10  ;;  %23 = sbr.rel (!%p21_p3) target bundleno = 9 (0x9), region = 101 }
 0x374   :  { %732 = vsyncpa [#allocation3], 1 }
 0x375   :  { %734 = vsyncpa [#allocation3 + $0x1], 1 }
 0x376   :  { %735 = vsyncpa [#allocation6], 1 }
 0x377   :  { %736 = vsyncpa [#allocation4], 1 }
 0x378   :  { %738 = vsyncpa [#allocation4 + $0x1], 1 }

</bundles_post_ra>
